<compile_context>
chip_gen: v6e
topology: v6e:2x2x1
jax: 0.10.0
libtpu: 0.0.40
codegen_flags: <defaults>
</compile_context>

<pallas_src>
import functools

import jax
import jax.numpy as jnp
from jax.experimental import pallas as pl
from jax.experimental.pallas import tpu as pltpu

_LANE = 128
_X_BLOCK_BYTES = 4 * 1024 * 1024  # per-buffer cap for the streamed x block


# ----------------------------- kernels ------------------------------------- #

def _linear_sigmoid_kernel(x_ref, w_ref, b_ref, o_ref, *, bf16_eup):
    # Fused: matmul (MXU, f32 accumulate) + bias add + sigmoid, all in VMEM.
    z = jnp.dot(x_ref[...], w_ref[...], preferred_element_type=jnp.float32)
    z = z + b_ref[...].astype(jnp.float32)
    if bf16_eup:                      # v6e/v7x only, and only for bf16 inputs
        z = z.astype(jnp.bfloat16)
    o_ref[...] = jax.nn.sigmoid(z).astype(o_ref.dtype)


def _mlp_sigmoid_kernel(x_ref, w1_ref, b1_ref, w2_ref, b2_ref, o_ref, *, bf16_eup):
    act_dtype = jnp.bfloat16 if bf16_eup else jnp.float32
    # Layer 1: Linear + ELU (alpha=1.0, torch default).
    h = jnp.dot(x_ref[...], w1_ref[...], preferred_element_type=jnp.float32)
    h = (h + b1_ref[...].astype(jnp.float32)).astype(act_dtype)
    h = jnp.where(h > 0, h, jnp.expm1(h))                       # ELU
    # Layer 2: Linear + sigmoid.
    z = jnp.dot(h.astype(w2_ref.dtype), w2_ref[...],
                preferred_element_type=jnp.float32)
    z = (z + b2_ref[...].astype(jnp.float32)).astype(act_dtype)
    o_ref[...] = jax.nn.sigmoid(z).astype(o_ref.dtype)


# ------------------------------ helpers ------------------------------------ #

def _round_up(x, m):
    return (x + m - 1) // m * m


def _sublane_granule(dtype):
    # Sub-32-bit dtypes pack rows along sublanes: 8 rows (f32), 16 (bf16), 32 (8-bit).
    bits = jnp.dtype(dtype).itemsize * 8
    return max(8, 256 // bits)


def _pick_tile(n_rows, tile_batch, dtype, row_bytes):
    """Batch-tile size: big (amortize ~0.35us/step), VMEM-safe, >=2 steps for
    large batches so v7x megacore gets both TensorCores busy."""
    g = _sublane_granule(dtype)
    n_rows = max(int(n_rows), 1)
    # Keep each x block under ~4 MiB (double-buffered by the pipeline).
    cap = max(g, (_X_BLOCK_BYTES // max(int(row_bytes), 1)) // g * g)
    tile_batch = max(g, min(int(tile_batch), cap))
    if n_rows <= 2 * g:
        return _round_up(n_rows, g)
    half = _round_up(pl.cdiv(n_rows, 2), g)       # floor of 2 grid steps
    return min(_round_up(tile_batch, g), half)


def _use_bf16_eup(x_dtype):
    # bf16 transcendentals only where the EUP has a bf16 path (v6e / v7x) and
    # the inputs are already bf16 (keeps the f32 path exact; v5e stays f32).
    if jnp.dtype(x_dtype) != jnp.dtype(jnp.bfloat16):
        return False
    try:
        kind = jax.devices()[0].device_kind.lower()
    except Exception:
        return False
    return ("v6" in kind) or ("v7" in kind) or ("7x" in kind)


def _linear_call(x, w, b2d, *, tile_batch, out_dtype, bf16_eup):
    n, k = x.shape
    m = w.shape[-1]
    tile = _pick_tile(n, tile_batch, x.dtype, k * jnp.dtype(x.dtype).itemsize)
    kernel = functools.partial(_linear_sigmoid_kernel, bf16_eup=bf16_eup)
    return pl.pallas_call(
        kernel,
        out_shape=jax.ShapeDtypeStruct((n, m), out_dtype),
        grid_spec=pltpu.PrefetchScalarGridSpec(
            num_scalar_prefetch=0,
            grid=(pl.cdiv(n, tile),),                 # partial tail block, no pad copy
            in_specs=[
                pl.BlockSpec((tile, k), lambda i: (i, 0)),
                # Constant index_map -> weight/bias stay resident across steps.
                pl.BlockSpec((k, m), lambda i: (0, 0)),
                pl.BlockSpec((1, m), lambda i: (0, 0)),
            ],
            out_specs=pl.BlockSpec((tile, m), lambda i: (i, 0)),
        ),
        compiler_params=pltpu.CompilerParams(
            dimension_semantics=("parallel",)),       # v7x: shard batch over 2 TCs
    )(x, w, b2d)


def _mlp_call(x, w1, b1_2d, w2, b2_2d, *, tile_batch, out_dtype, bf16_eup):
    n, k = x.shape
    hidden = w1.shape[-1]
    m = w2.shape[-1]
    tile = _pick_tile(n, tile_batch, x.dtype, k * jnp.dtype(x.dtype).itemsize)
    kernel = functools.partial(_mlp_sigmoid_kernel, bf16_eup=bf16_eup)
    return pl.pallas_call(
        kernel,
        out_shape=jax.ShapeDtypeStruct((n, m), out_dtype),
        grid_spec=pltpu.PrefetchScalarGridSpec(
            num_scalar_prefetch=0,
            grid=(pl.cdiv(n, tile),),
            in_specs=[
                pl.BlockSpec((tile, k), lambda i: (i, 0)),
                pl.BlockSpec((k, hidden), lambda i: (0, 0)),
                pl.BlockSpec((1, hidden), lambda i: (0, 0)),
                pl.BlockSpec((hidden, m), lambda i: (0, 0)),
                pl.BlockSpec((1, m), lambda i: (0, 0)),
            ],
            out_specs=pl.BlockSpec((tile, m), lambda i: (i, 0)),
        ),
        compiler_params=pltpu.CompilerParams(
            dimension_semantics=("parallel",)),
    )(x, w1, b1_2d, w2, b2_2d)


# ----------------------------- wrappers ------------------------------------ #

def logistic_regression_linear(x, w, b, *, tile_batch=4096, out_dtype=None):
    """y = sigmoid(x @ w + b).  x: (N, in), w: (in, out), b: (out,) or (1, out)."""
    n, in_size = x.shape
    out_size = w.shape[-1]
    out_dtype = out_dtype if out_dtype is not None else x.dtype
    bf16_eup = _use_bf16_eup(x.dtype)

    g = _LANE // out_size if (0 < out_size < _LANE and _LANE % out_size == 0) else 1
    if g > 1 and n % g == 0 and in_size * g <= 4096:
        # Lane-dense packing: group G=128/out rows per output row.
        #   x  (n, in)      -> (n/G, G*in)   free row-major bitcast
        #   W  (in, out)    -> block-diag (G*in, 128)
        #   b  (1, out)     -> tiled   (1, 128)
        # Output (n/G, 128) is fully lane-dense (unmasked stores, 16x fewer
        # VPU/EUP vregs in the epilogue); reshape back is a free bitcast.
        xp = x.reshape(n // g, g * in_size)
        wp = jnp.kron(jnp.eye(g, dtype=w.dtype), w)
        bp = jnp.tile(b.reshape(1, out_size), (1, g))
        yp = _linear_call(xp, wp, bp, tile_batch=max(tile_batch // g, 1),
                          out_dtype=out_dtype, bf16_eup=bf16_eup)
        return yp.reshape(n, out_size)

    # Fallback (ragged n or awkward out_size): masked-store path, still no pad copy.
    return _linear_call(x, w, b.reshape(1, out_size), tile_batch=tile_batch,
                        out_dtype=out_dtype, bf16_eup=bf16_eup)


def logistic_regression_mlp(x, w1, b1, w2, b2, *, tile_batch=2048, out_dtype=None):
    """y = sigmoid(ELU(x @ w1 + b1) @ w2 + b2)."""
    out_dtype = out_dtype if out_dtype is not None else x.dtype
    hidden = w1.shape[-1]
    out_size = w2.shape[-1]
    bf16_eup = _use_bf16_eup(x.dtype)
    # TODO(synk): lane-packing the MLP (block-diag weights) would make the
    # hidden matmul 16x redundant and MXU-bound on v5e/f32 -- not applied.
    return _mlp_call(x, w1, b1.reshape(1, hidden), w2, b2.reshape(1, out_size),
                     tile_batch=tile_batch, out_dtype=out_dtype, bf16_eup=bf16_eup)


# ------------------------- deterministic params ----------------------------- #

def _init_linear_params(key, in_size, out_size, dtype=jnp.float32):
    # Mimic torch.nn.Linear default init: U(-1/sqrt(in), 1/sqrt(in)).
    kw, kb = jax.random.split(key)
    bound = 1.0 / jnp.sqrt(jnp.float32(in_size))
    w = jax.random.uniform(kw, (in_size, out_size), dtype, -bound, bound)
    b = jax.random.uniform(kb, (1, out_size), dtype, -bound, bound)
    return w, b


def _ref_linear(x, w, b):
    return jax.nn.sigmoid(x.astype(jnp.float32) @ w.astype(jnp.float32)
                          + b.astype(jnp.float32))


def _ref_mlp(x, w1, b1, w2, b2):
    h = x.astype(jnp.float32) @ w1.astype(jnp.float32) + b1.astype(jnp.float32)
    h = jnp.where(h > 0, h, jnp.expm1(h))
    return jax.nn.sigmoid(h @ w2.astype(jnp.float32) + b2.astype(jnp.float32))


# --------------------------------- main ------------------------------------- #

if __name__ == "__main__":
    key = jax.random.PRNGKey(0)
    k_x, k_x2, k_l, k_m1, k_m2, k_xb, k_xc = jax.random.split(key, 7)

    in_size, out_size, hidden = 32, 8, 64
    w, b = _init_linear_params(k_l, in_size, out_size)
    w1, b1 = _init_linear_params(k_m1, in_size, hidden)
    w2, b2 = _init_linear_params(k_m2, hidden, out_size)

    # ---- f32, ragged batch (partial tail block, fallback unpacked path) ------
    x10 = jax.random.normal(k_x, (10, in_size), jnp.float32)
    y = jax.block_until_ready(logistic_regression_linear(x10, w, b))
    assert y.shape == (10, out_size)
    assert jnp.allclose(y, _ref_linear(x10, w, b), atol=1e-5, rtol=1e-5)

    # ---- f32, batch divisible by 16 -> lane-dense packed linear path ---------
    x160 = jax.random.normal(k_x2, (160, in_size), jnp.float32)
    y = jax.block_until_ready(logistic_regression_linear(x160, w, b))
    assert y.shape == (160, out_size)
    assert jnp.allclose(y, _ref_linear(x160, w, b), atol=1e-5, rtol=1e-5)

    # ---- f32 MLP (linear=False, layers=2, dropout=0 -> no dropout op) --------
    y = jax.block_until_ready(logistic_regression_mlp(x160, w1, b1, w2, b2))
    assert y.shape == (160, out_size)
    assert jnp.allclose(y, _ref_mlp(x160, w1, b1, w2, b2), atol=1e-5, rtol=1e-5)

    # ---- bf16 streaming path (packed linear, 2 grid steps) -------------------
    xb = jax.random.normal(k_xb, (1024, in_size), jnp.float32).astype(jnp.bfloat16)
    w16, b16 = w.astype(jnp.bfloat16), b.astype(jnp.bfloat16)
    y16 = jax.block_until_ready(
        logistic_regression_linear(xb, w16, b16, out_dtype=jnp.bfloat16))
    assert y16.shape == (1024, out_size) and y16.dtype == jnp.bfloat16
    assert jnp.allclose(y16.astype(jnp.float32), _ref_linear(xb, w16, b16),
                        atol=3e-2, rtol=3e-2)

    # ---- bf16 MLP, ragged large batch (2 steps, bf16 EUP on v6e/v7x) ---------
    xc = jax.random.normal(k_xc, (1000, in_size), jnp.float32).astype(jnp.bfloat16)
    w116, b116, w216, b216 = (a.astype(jnp.bfloat16) for a in (w1, b1, w2, b2))
    ym16 = jax.block_until_ready(
        logistic_regression_mlp(xc, w116, b116, w216, b216, out_dtype=jnp.bfloat16))
    assert ym16.shape == (1000, out_size) and ym16.dtype == jnp.bfloat16
    assert jnp.allclose(ym16.astype(jnp.float32),
                        _ref_mlp(xc, w116, b116, w216, b216),
                        atol=3e-2, rtol=3e-2)

    print("KERNEL_OK")
</pallas_src>

<mosaic_0001>
module attributes {stable_mosaic.version = 11 : i64} {
  func.func @_linear_sigmoid_kernel(%arg0: i32, %arg1: memref<16x32xf32, #tpu.memory_space<vmem>>, %arg2: memref<32x8xf32, #tpu.memory_space<vmem>>, %arg3: memref<1x8xf32, #tpu.memory_space<vmem>>, %arg4: memref<16x8xf32, #tpu.memory_space<vmem>>) attributes {dimension_semantics = [#tpu.dimension_semantics<parallel>], iteration_bounds = array<i64: 1>, scalar_prefetch = 0 : i64, scratch_operands = 0 : i64, tpu.core_type = #tpu.core_type<tc>, window_params = [{transform_indices = @transform_0, window_bounds = array<i64: 16, 32>}, {pipeline_mode = #tpu.pipeline_mode<synchronous>, transform_indices = @transform_1, window_bounds = array<i64: 32, 8>}, {pipeline_mode = #tpu.pipeline_mode<synchronous>, transform_indices = @transform_2, window_bounds = array<i64: 1, 8>}, {transform_indices = @transform_3, window_bounds = array<i64: 16, 8>}]} {
    %c0 = arith.constant 0 : index
    %c0_0 = arith.constant 0 : index
    %0 = vector.load %arg1[%c0, %c0_0] : memref<16x32xf32, #tpu.memory_space<vmem>>, vector<16x32xf32>
    %c0_1 = arith.constant 0 : index
    %c0_2 = arith.constant 0 : index
    %1 = vector.load %arg2[%c0_1, %c0_2] : memref<32x8xf32, #tpu.memory_space<vmem>>, vector<32x8xf32>
    %cst = arith.constant dense<0.000000e+00> : vector<16x8xf32>
    %2 = tpu.matmul %0, %1, %cst {dimension_numbers = #tpu.dot_dimension_numbers<[1], [0], [0], [1], [0, 0, 1, 1], [], []>} : vector<16x32xf32>, vector<32x8xf32>, vector<16x8xf32> -> vector<16x8xf32>
    %c0_3 = arith.constant 0 : index
    %c0_4 = arith.constant 0 : index
    %3 = vector.load %arg3[%c0_3, %c0_4] : memref<1x8xf32, #tpu.memory_space<vmem>>, vector<1x8xf32>
    %4 = vector.broadcast %3 : vector<1x8xf32> to vector<16x8xf32>
    %5 = arith.addf %2, %4 : vector<16x8xf32>
    %6 = arith.negf %5 : vector<16x8xf32>
    %7 = math.exp %6 : vector<16x8xf32>
    %cst_5 = arith.constant 1.000000e+00 : f32
    %8 = vector.broadcast %cst_5 : f32 to vector<16x8xf32>
    %9 = arith.addf %8, %7 : vector<16x8xf32>
    %10 = arith.divf %8, %9 : vector<16x8xf32>
    %c0_6 = arith.constant 0 : index
    %c0_7 = arith.constant 0 : index
    %11 = vector.load %arg4[%c0_6, %c0_7] : memref<16x8xf32, #tpu.memory_space<vmem>>, vector<16x8xf32>
    tpu.vector_store %arg4[%c0_6, %c0_7], %10 {strides = array<i32>} : memref<16x8xf32, #tpu.memory_space<vmem>>, vector<16x8xf32>,
    return
  }
  func.func @transform_0(%arg0: i32) -> (i32, i32) {
    %c0_i32 = arith.constant 0 : i32
    %c0_i32_0 = arith.constant 0 : i32
    return %arg0, %c0_i32 : i32, i32
  }
  func.func @transform_1(%arg0: i32) -> (i32, i32) {
    %c0_i32 = arith.constant 0 : i32
    %c0_i32_0 = arith.constant 0 : i32
    %c0_i32_1 = arith.constant 0 : i32
    return %c0_i32, %c0_i32_0 : i32, i32
  }
  func.func @transform_2(%arg0: i32) -> (i32, i32) {
    %c0_i32 = arith.constant 0 : i32
    %c0_i32_0 = arith.constant 0 : i32
    %c0_i32_1 = arith.constant 0 : i32
    return %c0_i32, %c0_i32_0 : i32, i32
  }
  func.func @transform_3(%arg0: i32) -> (i32, i32) {
    %c0_i32 = arith.constant 0 : i32
    %c0_i32_0 = arith.constant 0 : i32
    return %arg0, %c0_i32 : i32, i32
  }
}

</mosaic_0001>

<bundles_post_ra>
// kernel: tpu_custom_call.1
= control target key start
LH: loop header
LB: loop body
LE: loop exit
PB: predicated region body
PF: predicated region fallthrough
CT: control target
= control target key end

     0   :  { %vm27_vm0 = vcmask 261120   ;;  %vm121_vm1 = vcmask 64512   ;;  %s207_s1 = inlined_call_operand.vmem [shape: f32[32,8], index: 1, kind: input, shape index: {}]   ;;  %s208_s0 = inlined_call_operand.vmem [shape: f32[10,32], index: 0, kind: input, shape index: {}]   ;;  %s209_s2 = inlined_call_operand.vmem [shape: f32[1,8], index: 2, kind: input, shape index: {}]   ;;  %s210_s3 = inlined_call_operand.vmem [shape: f32[10,8], index: 3, kind: output, shape index: {}]  }
   0x1   :  { %v19_v0 = vld [vmem:[%s207_s1 + $0x18] sm:$0xff]  ;;  %v18_v1 = vld [vmem:[%s207_s1 + $0x10] sm:$0xff]  ;;  %v14_v2 = vld [vmem:[%s208_s0] sm:$0xff] }
   0x2   :  { %139 = vmatprep.subr.mxu0 %v19_v0  ;;  %v17_v3 = vld [vmem:[%s207_s1 + $0x8] sm:$0xff]  ;;  %147 = vmatprep.mubr.msk.f32.mxu0 %vm27_vm0, %v14_v2  ;;  %v16_v4 = vld [vmem:[%s207_s1] sm:$0xff] }
   0x3   :  { %140 = vmatpush3.msra.mxu0 %v19_v0  ;;  %v15_v5 = vld [vmem:[%s208_s0 + $0x8] sm:$0xff]  ;;  %v128_v6 = vld [vmem:[%s209_s2] ss:$0 sm:$0xff] }
   0x4   :  { %141 = vmatprep.subr.mxu0 %v18_v1 }
   0x5   :  { %142 = vmatpush3.msra.mxu0 %v18_v1 }
   0x6   :  { %143 = vmatprep.subr.mxu0 %v17_v3 }
   0x7   :  { %144 = vmatpush3.msra.mxu0 %v17_v3 }
   0x8   :  { %145 = vmatprep.subr.mxu0 %v16_v4 }
   0x9   :  { %146 = vmatpush3.msra.mxu0 %v16_v4 }
   0xa   :  { %148 = vmatmul.mubr.msk.f32.vlgmr.msra.gmra.mxu0 %vm27_vm0, %v15_v5 }
  0xca   :  { %v149_v7 = vpop.f32.mrf.mxu0 }
  0xcb   :  { %v106_v8 = vadd.f32 %v149_v7, %v128_v6 }
  0xcc   :  { %v100_v9 = vpop.f32.mrf.mxu0 }
  0xcd   :  { %v132_v10 = vmul.f32 -1.442695, %v106_v8  ;;  %v101_v11 = vadd.f32 %v128_v6, %v100_v9 }
  0xcf   :  { %150 = vpow2.f32 %v132_v10  ;;  %v131_v12 = vmul.f32 -1.442695, %v101_v11 }
  0xd1   :  { %152 = vpow2.f32 %v131_v12 }
  0xdc   :  { %v151_v13 = vpop.eup %150 }
  0xdd   :  { %v116_v14 = vadd.f32 1.0, %v151_v13 }
  0xde   :  { %v153_v15 = vpop.eup %152 }
  0xdf   :  { %154 = vrcp.f32 %v116_v14  ;;  %v115_v16 = vadd.f32 1.0, %v153_v15 }
  0xe1   :  { %156 = vrcp.f32 %v115_v16 }
  0xec   :  { %v155_v17 = vpop.eup %154 }
  0xed   :  { %123 = vst.msk [vmem:[%s210_s3 + $0x8] sm:$0xff] %vm121_vm1, %v155_v17 }
  0xee   :  { %v157_v18 = vpop.eup %156 }
  0xef   :  { %122 = vst.msk [vmem:[%s210_s3] sm:$0xff] %vm121_vm1, %v157_v18 }

</bundles_post_ra>
